<compile_context>
chip_gen: v7x
topology: tpu7x:2x2x1
jax: 0.10.0
libtpu: 0.0.40
codegen_flags: <defaults>
</compile_context>

<pallas_src>
import jax
import jax.numpy as jnp
from jax.experimental import pallas as pl
from jax.experimental.pallas import tpu as pltpu

NB_MOVIES = 256   # synthetic "nb_movies" (lane-aligned, small)
H1 = 20
H2 = 10

# Max batch rows per grid step.  Worst case (f32 in, f32 out, tile_b=4096):
# 2 * (4 MiB in + 4 MiB out) double-buffered = 16 MiB + ~0.6 MiB of resident
# weights, so we raise the scoped-VMEM cap explicitly (v5e default is 16 MiB).
MAX_TILE_B = 4096
VMEM_LIMIT_BYTES = 40 * 1024 * 1024   # <= v7x's 64 MiB physical VMEM


def _round_up(n, m):
    return -(-n // m) * m


def _sae_kernel(x_ref, w1_ref, b1_ref, w2_ref, b2_ref,
                w3_ref, b3_ref, w4_ref, b4_ref, o_ref):
    """Fused forward: sigmoid(fc1) -> sigmoid(fc2) -> sigmoid(fc3) -> fc4.

    x arrives in its HBM dtype and is cast to the MXU compute dtype (taken from
    the weights) in-kernel; matmuls accumulate in f32, sigmoids stay in f32.
    """
    cdt = w1_ref.dtype
    x = x_ref[...].astype(cdt)

    h = jnp.dot(x, w1_ref[...], preferred_element_type=jnp.float32) + b1_ref[...]
    h = jax.nn.sigmoid(h).astype(cdt)

    h = jnp.dot(h, w2_ref[...], preferred_element_type=jnp.float32) + b2_ref[...]
    h = jax.nn.sigmoid(h).astype(cdt)

    h = jnp.dot(h, w3_ref[...], preferred_element_type=jnp.float32) + b3_ref[...]
    h = jax.nn.sigmoid(h).astype(cdt)

    y = jnp.dot(h, w4_ref[...], preferred_element_type=jnp.float32) + b4_ref[...]
    o_ref[...] = y.astype(o_ref.dtype)


def stacked_autoenc_forward(x, params, *, compute_dtype=jnp.bfloat16,
                            out_dtype=jnp.float32):
    """x: (B, NB_MOVIES) in its native dtype. params: (in,out) W + (1,out) b."""
    B, D = x.shape
    assert D == NB_MOVIES

    # Tile selection:
    #  * aim for >= 2 grid steps (v7x megacore sharding of a DMA-bound kernel),
    #  * 16-row alignment (full bf16 sublane packing, satisfies the 8-sublane rule),
    #  * capped so double-buffered in/out tiles + weights fit comfortably in VMEM.
    tile_b = min(MAX_TILE_B, max(16, _round_up(pl.cdiv(B, 2), 16)))
    grid = (pl.cdiv(B, tile_b),)   # ragged last block is masked by Pallas

    # Weights in the MXU compute dtype; biases stay f32 (added to the f32 acc).
    # These are tiny (~42 KiB) and loop-invariant, so wrapper-side casts are free.
    ws = [params[f"w{i}"].astype(compute_dtype) for i in range(1, 5)]
    bs = [params[f"b{i}"].astype(jnp.float32) for i in range(1, 5)]

    # Loop-invariant operands (constant block index => no re-DMA per step).
    full = lambda arr: pl.BlockSpec(arr.shape, lambda i: (0, 0))

    rows = grid[0] * tile_b
    flops = 2 * rows * (NB_MOVIES * H1 + H1 * H2 + H2 * H1 + H1 * NB_MOVIES)
    transcendentals = rows * (H1 + H2 + H1)               # sigmoid exps
    bytes_accessed = (
        B * NB_MOVIES * x.dtype.itemsize                   # input stream
        + B * NB_MOVIES * jnp.dtype(out_dtype).itemsize    # output stream
        + sum(a.size * a.dtype.itemsize for a in ws + bs)) # resident weights

    out = pl.pallas_call(
        _sae_kernel,
        out_shape=jax.ShapeDtypeStruct((B, NB_MOVIES), out_dtype),
        grid=grid,
        in_specs=[
            pl.BlockSpec((tile_b, NB_MOVIES), lambda i: (i, 0)),   # x tile
            full(ws[0]), full(bs[0]),
            full(ws[1]), full(bs[1]),
            full(ws[2]), full(bs[2]),
            full(ws[3]), full(bs[3]),
        ],
        out_specs=pl.BlockSpec((tile_b, NB_MOVIES), lambda i: (i, 0)),
        compiler_params=pltpu.CompilerParams(
            dimension_semantics=("parallel",),
            vmem_limit_bytes=VMEM_LIMIT_BYTES),
        cost_estimate=pl.CostEstimate(
            flops=flops,
            transcendentals=transcendentals,
            bytes_accessed=bytes_accessed),
    )(x, ws[0], bs[0], ws[1], bs[1], ws[2], bs[2], ws[3], bs[3])

    return out


def init_params(key):
    """Deterministic init mimicking nn.Linear default U(-1/sqrt(fan_in), +)."""
    dims = [(NB_MOVIES, H1), (H1, H2), (H2, H1), (H1, NB_MOVIES)]
    params = {}
    keys = jax.random.split(key, 2 * len(dims))
    for idx, (fan_in, fan_out) in enumerate(dims):
        bound = 1.0 / jnp.sqrt(fan_in)
        # stored already transposed: (in, out), so y = x @ W + b
        w = jax.random.uniform(keys[2 * idx], (fan_in, fan_out),
                               jnp.float32, -bound, bound)
        b = jax.random.uniform(keys[2 * idx + 1], (1, fan_out),
                               jnp.float32, -bound, bound)
        params[f"w{idx + 1}"] = w
        params[f"b{idx + 1}"] = b
    return params


def reference_forward(x, p, compute_dtype=jnp.float32):
    """Pure-JAX reference replicating the kernel's dtype strategy."""
    h = x.astype(compute_dtype)
    for i in (1, 2, 3):
        w = p[f"w{i}"].astype(compute_dtype)
        b = p[f"b{i}"].astype(jnp.float32)
        h = jnp.dot(h, w, preferred_element_type=jnp.float32) + b
        h = jax.nn.sigmoid(h).astype(compute_dtype)
    w4 = p["w4"].astype(compute_dtype)
    b4 = p["b4"].astype(jnp.float32)
    return jnp.dot(h, w4, preferred_element_type=jnp.float32) + b4


if __name__ == "__main__":
    key = jax.random.PRNGKey(0)
    k_x, k_p = jax.random.split(key)

    # Deliberately not a multiple of 16 -> exercises the ragged/masked tail
    # block (tile_b=16, grid=2, last block has only 4 valid rows).
    B = 20
    x = jax.random.uniform(k_x, (B, NB_MOVIES), jnp.float32, 0.0, 5.0)
    params = init_params(k_p)

    # f32 path: strict check against the original module semantics.
    out_f32 = jax.block_until_ready(
        stacked_autoenc_forward(x, params, compute_dtype=jnp.float32))
    ref_f32 = reference_forward(x, params, compute_dtype=jnp.float32)
    assert out_f32.shape == (B, NB_MOVIES) and out_f32.dtype == jnp.float32
    assert jnp.allclose(out_f32, ref_f32, atol=1e-4, rtol=1e-4), \
        f"f32 max err {jnp.max(jnp.abs(out_f32 - ref_f32))}"

    # bf16-compute path (in-kernel cast): compare against matched-precision ref.
    out_bf16 = jax.block_until_ready(
        stacked_autoenc_forward(x, params, compute_dtype=jnp.bfloat16))
    ref_bf16 = reference_forward(x, params, compute_dtype=jnp.bfloat16)
    assert out_bf16.shape == (B, NB_MOVIES)
    assert jnp.allclose(out_bf16, ref_bf16, atol=5e-2, rtol=5e-2), \
        f"bf16 max err {jnp.max(jnp.abs(out_bf16 - ref_bf16))}"

    # bf16-output path (bandwidth-optimized writeback) -- run and sanity-check.
    out_bf16_io = jax.block_until_ready(
        stacked_autoenc_forward(x, params, compute_dtype=jnp.bfloat16,
                                out_dtype=jnp.bfloat16))
    assert out_bf16_io.shape == (B, NB_MOVIES)
    assert out_bf16_io.dtype == jnp.bfloat16
    assert jnp.allclose(out_bf16_io.astype(jnp.float32), ref_bf16,
                        atol=1e-1, rtol=1e-1)

    print("KERNEL_OK")
</pallas_src>

<mosaic_0001>
module attributes {stable_mosaic.version = 11 : i64} {
  func.func @_sae_kernel(%arg0: i32, %arg1: memref<16x256xf32, #tpu.memory_space<vmem>>, %arg2: memref<256x20xf32, #tpu.memory_space<vmem>>, %arg3: memref<1x20xf32, #tpu.memory_space<vmem>>, %arg4: memref<20x10xf32, #tpu.memory_space<vmem>>, %arg5: memref<1x10xf32, #tpu.memory_space<vmem>>, %arg6: memref<10x20xf32, #tpu.memory_space<vmem>>, %arg7: memref<1x20xf32, #tpu.memory_space<vmem>>, %arg8: memref<20x256xf32, #tpu.memory_space<vmem>>, %arg9: memref<1x256xf32, #tpu.memory_space<vmem>>, %arg10: memref<16x256xf32, #tpu.memory_space<vmem>>) attributes {dimension_semantics = [#tpu.dimension_semantics<parallel>], iteration_bounds = array<i64: 2>, scalar_prefetch = 0 : i64, scratch_operands = 0 : i64, tpu.core_type = #tpu.core_type<tc>, window_params = [{transform_indices = @transform_0, window_bounds = array<i64: 16, 256>}, {pipeline_mode = #tpu.pipeline_mode<synchronous>, transform_indices = @transform_1, window_bounds = array<i64: 256, 20>}, {pipeline_mode = #tpu.pipeline_mode<synchronous>, transform_indices = @transform_2, window_bounds = array<i64: 1, 20>}, {pipeline_mode = #tpu.pipeline_mode<synchronous>, transform_indices = @transform_3, window_bounds = array<i64: 20, 10>}, {pipeline_mode = #tpu.pipeline_mode<synchronous>, transform_indices = @transform_4, window_bounds = array<i64: 1, 10>}, {pipeline_mode = #tpu.pipeline_mode<synchronous>, transform_indices = @transform_5, window_bounds = array<i64: 10, 20>}, {pipeline_mode = #tpu.pipeline_mode<synchronous>, transform_indices = @transform_6, window_bounds = array<i64: 1, 20>}, {pipeline_mode = #tpu.pipeline_mode<synchronous>, transform_indices = @transform_7, window_bounds = array<i64: 20, 256>}, {pipeline_mode = #tpu.pipeline_mode<synchronous>, transform_indices = @transform_8, window_bounds = array<i64: 1, 256>}, {transform_indices = @transform_9, window_bounds = array<i64: 16, 256>}]} {
    %c0 = arith.constant 0 : index
    %c0_0 = arith.constant 0 : index
    %0 = vector.load %arg1[%c0, %c0_0] : memref<16x256xf32, #tpu.memory_space<vmem>>, vector<16x256xf32>
    %c0_1 = arith.constant 0 : index
    %c0_2 = arith.constant 0 : index
    %1 = vector.load %arg2[%c0_1, %c0_2] : memref<256x20xf32, #tpu.memory_space<vmem>>, vector<256x20xf32>
    %cst = arith.constant dense<0.000000e+00> : vector<16x20xf32>
    %2 = tpu.matmul %0, %1, %cst {dimension_numbers = #tpu.dot_dimension_numbers<[1], [0], [0], [1], [0, 0, 1, 1], [], []>} : vector<16x256xf32>, vector<256x20xf32>, vector<16x20xf32> -> vector<16x20xf32>
    %c0_3 = arith.constant 0 : index
    %c0_4 = arith.constant 0 : index
    %3 = vector.load %arg3[%c0_3, %c0_4] : memref<1x20xf32, #tpu.memory_space<vmem>>, vector<1x20xf32>
    %4 = vector.broadcast %3 : vector<1x20xf32> to vector<16x20xf32>
    %5 = arith.addf %2, %4 : vector<16x20xf32>
    %6 = arith.negf %5 : vector<16x20xf32>
    %7 = math.exp %6 : vector<16x20xf32>
    %cst_5 = arith.constant 1.000000e+00 : f32
    %8 = vector.broadcast %cst_5 : f32 to vector<16x20xf32>
    %9 = arith.addf %8, %7 : vector<16x20xf32>
    %10 = arith.divf %8, %9 : vector<16x20xf32>
    %c0_6 = arith.constant 0 : index
    %c0_7 = arith.constant 0 : index
    %11 = vector.load %arg4[%c0_6, %c0_7] : memref<20x10xf32, #tpu.memory_space<vmem>>, vector<20x10xf32>
    %cst_8 = arith.constant dense<0.000000e+00> : vector<16x10xf32>
    %12 = tpu.matmul %10, %11, %cst_8 {dimension_numbers = #tpu.dot_dimension_numbers<[1], [0], [0], [1], [0, 0, 1, 1], [], []>} : vector<16x20xf32>, vector<20x10xf32>, vector<16x10xf32> -> vector<16x10xf32>
    %c0_9 = arith.constant 0 : index
    %c0_10 = arith.constant 0 : index
    %13 = vector.load %arg5[%c0_9, %c0_10] : memref<1x10xf32, #tpu.memory_space<vmem>>, vector<1x10xf32>
    %14 = vector.broadcast %13 : vector<1x10xf32> to vector<16x10xf32>
    %15 = arith.addf %12, %14 : vector<16x10xf32>
    %16 = arith.negf %15 : vector<16x10xf32>
    %17 = math.exp %16 : vector<16x10xf32>
    %cst_11 = arith.constant 1.000000e+00 : f32
    %18 = vector.broadcast %cst_11 : f32 to vector<16x10xf32>
    %19 = arith.addf %18, %17 : vector<16x10xf32>
    %20 = arith.divf %18, %19 : vector<16x10xf32>
    %c0_12 = arith.constant 0 : index
    %c0_13 = arith.constant 0 : index
    %21 = vector.load %arg6[%c0_12, %c0_13] : memref<10x20xf32, #tpu.memory_space<vmem>>, vector<10x20xf32>
    %cst_14 = arith.constant dense<0.000000e+00> : vector<16x20xf32>
    %22 = tpu.matmul %20, %21, %cst_14 {dimension_numbers = #tpu.dot_dimension_numbers<[1], [0], [0], [1], [0, 0, 1, 1], [], []>} : vector<16x10xf32>, vector<10x20xf32>, vector<16x20xf32> -> vector<16x20xf32>
    %c0_15 = arith.constant 0 : index
    %c0_16 = arith.constant 0 : index
    %23 = vector.load %arg7[%c0_15, %c0_16] : memref<1x20xf32, #tpu.memory_space<vmem>>, vector<1x20xf32>
    %24 = vector.broadcast %23 : vector<1x20xf32> to vector<16x20xf32>
    %25 = arith.addf %22, %24 : vector<16x20xf32>
    %26 = arith.negf %25 : vector<16x20xf32>
    %27 = math.exp %26 : vector<16x20xf32>
    %cst_17 = arith.constant 1.000000e+00 : f32
    %28 = vector.broadcast %cst_17 : f32 to vector<16x20xf32>
    %29 = arith.addf %28, %27 : vector<16x20xf32>
    %30 = arith.divf %28, %29 : vector<16x20xf32>
    %c0_18 = arith.constant 0 : index
    %c0_19 = arith.constant 0 : index
    %31 = vector.load %arg8[%c0_18, %c0_19] : memref<20x256xf32, #tpu.memory_space<vmem>>, vector<20x256xf32>
    %cst_20 = arith.constant dense<0.000000e+00> : vector<16x256xf32>
    %32 = tpu.matmul %30, %31, %cst_20 {dimension_numbers = #tpu.dot_dimension_numbers<[1], [0], [0], [1], [0, 0, 1, 1], [], []>} : vector<16x20xf32>, vector<20x256xf32>, vector<16x256xf32> -> vector<16x256xf32>
    %c0_21 = arith.constant 0 : index
    %c0_22 = arith.constant 0 : index
    %33 = vector.load %arg9[%c0_21, %c0_22] : memref<1x256xf32, #tpu.memory_space<vmem>>, vector<1x256xf32>
    %34 = vector.broadcast %33 : vector<1x256xf32> to vector<16x256xf32>
    %35 = arith.addf %32, %34 : vector<16x256xf32>
    %c0_23 = arith.constant 0 : index
    %c0_24 = arith.constant 0 : index
    %36 = vector.load %arg10[%c0_23, %c0_24] : memref<16x256xf32, #tpu.memory_space<vmem>>, vector<16x256xf32>
    tpu.vector_store %arg10[%c0_23, %c0_24], %35 {strides = array<i32>} : memref<16x256xf32, #tpu.memory_space<vmem>>, vector<16x256xf32>,
    return
  }
  func.func @transform_0(%arg0: i32) -> (i32, i32) {
    %c0_i32 = arith.constant 0 : i32
    %c0_i32_0 = arith.constant 0 : i32
    return %arg0, %c0_i32 : i32, i32
  }
  func.func @transform_1(%arg0: i32) -> (i32, i32) {
    %c0_i32 = arith.constant 0 : i32
    %c0_i32_0 = arith.constant 0 : i32
    %c0_i32_1 = arith.constant 0 : i32
    return %c0_i32, %c0_i32_0 : i32, i32
  }
  func.func @transform_2(%arg0: i32) -> (i32, i32) {
    %c0_i32 = arith.constant 0 : i32
    %c0_i32_0 = arith.constant 0 : i32
    %c0_i32_1 = arith.constant 0 : i32
    return %c0_i32, %c0_i32_0 : i32, i32
  }
  func.func @transform_3(%arg0: i32) -> (i32, i32) {
    %c0_i32 = arith.constant 0 : i32
    %c0_i32_0 = arith.constant 0 : i32
    %c0_i32_1 = arith.constant 0 : i32
    return %c0_i32, %c0_i32_0 : i32, i32
  }
  func.func @transform_4(%arg0: i32) -> (i32, i32) {
    %c0_i32 = arith.constant 0 : i32
    %c0_i32_0 = arith.constant 0 : i32
    %c0_i32_1 = arith.constant 0 : i32
    return %c0_i32, %c0_i32_0 : i32, i32
  }
  func.func @transform_5(%arg0: i32) -> (i32, i32) {
    %c0_i32 = arith.constant 0 : i32
    %c0_i32_0 = arith.constant 0 : i32
    %c0_i32_1 = arith.constant 0 : i32
    return %c0_i32, %c0_i32_0 : i32, i32
  }
  func.func @transform_6(%arg0: i32) -> (i32, i32) {
    %c0_i32 = arith.constant 0 : i32
    %c0_i32_0 = arith.constant 0 : i32
    %c0_i32_1 = arith.constant 0 : i32
    return %c0_i32, %c0_i32_0 : i32, i32
  }
  func.func @transform_7(%arg0: i32) -> (i32, i32) {
    %c0_i32 = arith.constant 0 : i32
    %c0_i32_0 = arith.constant 0 : i32
    %c0_i32_1 = arith.constant 0 : i32
    return %c0_i32, %c0_i32_0 : i32, i32
  }
  func.func @transform_8(%arg0: i32) -> (i32, i32) {
    %c0_i32 = arith.constant 0 : i32
    %c0_i32_0 = arith.constant 0 : i32
    %c0_i32_1 = arith.constant 0 : i32
    return %c0_i32, %c0_i32_0 : i32, i32
  }
  func.func @transform_9(%arg0: i32) -> (i32, i32) {
    %c0_i32 = arith.constant 0 : i32
    %c0_i32_0 = arith.constant 0 : i32
    return %arg0, %c0_i32 : i32, i32
  }
}

</mosaic_0001>

<bundles_post_ra>
// kernel: tpu_custom_call.1
= control target key start
LH: loop header
LB: loop body
LE: loop exit
PB: predicated region body
PF: predicated region fallthrough
CT: control target
= control target key end

     0   :  { %14 = vsyncpa [#allocation3], 0  ;;  %s1515_s0 = inlined_call_operand.vmem [shape: f32[20,256], index: 0, kind: input, shape index: {}]   ;;  %s1516_s1 = inlined_call_operand.vmem [shape: f32[256,20], index: 1, kind: input, shape index: {}]   ;;  %s1517_s2 = inlined_call_operand.vmem [shape: f32[1,20], index: 2, kind: input, shape index: {}]   ;;  %s1518_s3 = inlined_call_operand.vmem [shape: f32[20,10], index: 3, kind: input, shape index: {}]   ;;  %s1519_s4 = inlined_call_operand.vmem [shape: f32[1,10], index: 4, kind: input, shape index: {}]   ;;  %s1520_s5 = inlined_call_operand.vmem [shape: f32[10,20], index: 5, kind: input, shape index: {}]   ;;  %s1521_s6 = inlined_call_operand.vmem [shape: f32[1,20], index: 6, kind: input, shape index: {}]   ;;  %s1522_s7 = inlined_call_operand.vmem [shape: f32[20,256], index: 7, kind: input, shape index: {}]   ;;  %s1523_s8 = inlined_call_operand.vmem [shape: f32[1,256], index: 8, kind: input, shape index: {}]   ;;  %s1524_s9 = inlined_call_operand.hbm [shape: f32[20,256], index: 9, kind: output, shape index: {}]  }
   0x1   :  { %16 = vsyncpa [#allocation3 + $0x1], 0  ;;  %s1243_s30 = smov 0   ;;  %s1245_s10 = smov 0  }
   0x2   :  { %s1247_s11 = smov 0   ;;  %s1249_s12 = smov 0  }
   0x3 LB: > { %1526 = sst [smem:[#allocation5_spill]] %s1182_s11  ;;  %s1264_s13 = sadd.s32 4294967295, %s1186_s12   ;;  %s1186_s12 = sphi %s1249_s12, %s1534_s12   ;;  %s1182_s11 = sphi %s1247_s11, %s1531_s11   ;;  %s1178_s10 = sphi %s1245_s10, %s1533_s10   ;;  %s1174_s30 = sphi %s1243_s30, %s1532_s30  }
   0x4   : > { %s907_s14 = sadd.s32 4294967294, %s1186_s12   ;;  %s1268_s15 = sadd.s32 1, %s1186_s12  }
   0x5   : > { %s223_s16 = sadd.s32 1, %s1182_s11  ;;  %s220_s17 = ssub.s32 %s1186_s12, %s1268_s15 }
   0x6   : > { %p233_p0 = scmp.ne.s32.totalorder %s1182_s11, %s1178_s10  ;;  %p221_p1 = scmp.eq.s32.totalorder %s220_s17, 0 }
   0x7   : > { %p234_p2 = scmp.eq.s32.totalorder %s1264_s13, 1  ;;  %p239_p3 = scmp.ne.s32.totalorder %s1178_s10, %s1174_s30 }
   0x8   : > { %p240_p4 = scmp.eq.s32.totalorder %s907_s14, 1  ;;  %p910_p7 = scmp.ge.s32.totalorder %s1186_s12, 1 }
   0x9   : > { %s1279_s18 = scalar_select %p221_p1, %s1182_s11, %s223_s16  }
   0xa   : > { %p1281_p5 = por %p234_p2, %p233_p0  ;;  %p1285_p6 = por %p240_p4, %p239_p3 }
   0xb   : > { %1527 = sst [smem:[#allocation6_spill]] %s1279_s18  ;;  %p302_p8 = scmp.lt.s32.totalorder %s1186_s12, 3 }
   0xd   : > { %p303_p9 = pnand %p910_p7, %p302_p8 }
   0xe   : > { %v387_v0 = vld [vmem:[%s1516_s1 + $0x80] sm:$0xff] (!%p303_p9)  ;;  %v388_v1 = vld [vmem:[%s1516_s1 + $0x88] sm:$0xff] (!%p303_p9)  ;;  %s1301_s27 = sshll.u32 (!%p303_p9), %s1264_s13, 1  ;;  %v389_v5 = vld [vmem:[%s1516_s1 + $0x90] sm:$0xff] (!%p303_p9)  ;;  %vm514_vm0 = vcmask (!%p303_p9), 1043456   ;;  %vm507_vm1 = vcmask (!%p303_p9), 162816  }
   0xf   : > { %306 = sbr.rel (%p303_p9) target bundleno = 1027 (0x403), region = 56  ;;  %v371_v2 = vld [vmem:[%s1516_s1] sm:$0xff] (!%p303_p9)  ;;  %v1012_v3 = vpack.c.bf16 (!%p303_p9), %v388_v1, %v387_v0  ;;  %v372_v4 = vld [vmem:[%s1516_s1 + $0x8] sm:$0xff] (!%p303_p9)  ;;  %v390_v6 = vld [vmem:[%s1516_s1 + $0x98] sm:$0xff] (!%p303_p9)  ;;  %p350_p10 = scmp.lt.s32.totalorder (!%p303_p9), %s1301_s27, 2  ;;  %vm621_vm2 = vcmask (!%p303_p9), 1041408  }
  0x10   : > { %v1014_v7 = vpack.c.bf16 (!%p303_p9), %v372_v4, %v371_v2  ;;  %v1016_v8 = vpack.c.bf16 (!%p303_p9), %v390_v6, %v389_v5  ;;  %v373_v9 = vld [vmem:[%s1516_s1 + $0x10] sm:$0xff] (!%p303_p9)  ;;  %v374_v10 = vld [vmem:[%s1516_s1 + $0x18] sm:$0xff] (!%p303_p9)  ;;  %v391_v11 = vld [vmem:[%s1516_s1 + $0xa0] sm:$0xff] (!%p303_p9)  ;;  %vm1188_vm3 = vmmov (!%p303_p9), 1   ;;  %vm614_vm5 = vcmask (!%p303_p9), 80896   ;;  %s341_s21 = sand.u32 (!%p303_p9), 1, %s1178_s10  }
  0x11   : > { %1013 = vmatprep.subr.bf16.mxu0 (!%p303_p9), %v1012_v3  ;;  %v392_v12 = vld [vmem:[%s1516_s1 + $0xa8] sm:$0xff] (!%p303_p9)  ;;  %v1018_v13 = vpack.c.bf16 (!%p303_p9), %v374_v10, %v373_v9  ;;  %v375_v15 = vld [vmem:[%s1516_s1 + $0x20] sm:$0xff] (!%p303_p9)  ;;  %v393_v17 = vld [vmem:[%s1516_s1 + $0xb0] sm:$0xff] (!%p303_p9)  ;;  %s911_s25 = sshll.u32 (!%p303_p9), %s341_s21, 5  ;;  %s1455_s18 = scalar_lea.sflag (!%p303_p9), [#allocation3], %s341_s21 }
  0x12   : > { %1015 = vmatpush3.bf16.msra.mxu0 (!%p303_p9), %v1014_v7  ;;  %v1020_v14 = vpack.c.bf16 (!%p303_p9), %v392_v12, %v391_v11  ;;  %v376_v16 = vld [vmem:[%s1516_s1 + $0x28] sm:$0xff] (!%p303_p9)  ;;  %v394_v18 = vld [vmem:[%s1516_s1 + $0xb8] sm:$0xff] (!%p303_p9)  ;;  %v377_v21 = vld [vmem:[%s1516_s1 + $0x30] sm:$0xff] (!%p303_p9) }
  0x13   : > { %1017 = vmatprep.subr.bf16.mxu0 (!%p303_p9), %v1016_v8  ;;  %v1022_v19 = vpack.c.bf16 (!%p303_p9), %v376_v16, %v375_v15  ;;  %v1024_v20 = vpack.c.bf16 (!%p303_p9), %v394_v18, %v393_v17  ;;  %v378_v22 = vld [vmem:[%s1516_s1 + $0x38] sm:$0xff] (!%p303_p9)  ;;  %v395_v23 = vld [vmem:[%s1516_s1 + $0xc0] sm:$0xff] (!%p303_p9)  ;;  %v396_v24 = vld [vmem:[%s1516_s1 + $0xc8] sm:$0xff] (!%p303_p9) }
  0x14   : > { %v1026_v26 = vpack.c.bf16 (!%p303_p9), %v378_v22, %v377_v21  ;;  %v1028_v27 = vpack.c.bf16 (!%p303_p9), %v396_v24, %v395_v23  ;;  %v379_v28 = vld [vmem:[%s1516_s1 + $0x40] sm:$0xff] (!%p303_p9)  ;;  %v380_v29 = vld [vmem:[%s1516_s1 + $0x48] sm:$0xff] (!%p303_p9)  ;;  %v397_v30 = vld [vmem:[%s1516_s1 + $0xd0] sm:$0xff] (!%p303_p9) }
  0x15   : > { %v398_v31 = vld [vmem:[%s1516_s1 + $0xd8] sm:$0xff] (!%p303_p9)  ;;  %v1030_v32 = vpack.c.bf16 (!%p303_p9), %v380_v29, %v379_v28  ;;  %v381_v34 = vld [vmem:[%s1516_s1 + $0x50] sm:$0xff] (!%p303_p9)  ;;  %v399_v36 = vld [vmem:[%s1516_s1 + $0xe0] sm:$0xff] (!%p303_p9) }
  0x16   : > { %s351_s16 = scalar_select %p350_p10, %s1301_s27, 2  ;;  %1019 = vmatpush3.bf16.msra.mxu0 %v1018_v13  ;;  %v1032_v33 = vpack.c.bf16 %v398_v31, %v397_v30  ;;  %v382_v35 = vld [vmem:[%s1516_s1 + $0x58] sm:$0xff]  ;;  %v400_v37 = vld [vmem:[%s1516_s1 + $0xe8] sm:$0xff]  ;;  %v383_v40 = vld [vmem:[%s1516_s1 + $0x60] sm:$0xff]  ;;  %v1189_v30 = vmov 0.0  }
  0x17   : > { %1021 = vmatprep.subr.bf16.mxu0 %v1020_v14  ;;  %v1034_v38 = vpack.c.bf16 %v382_v35, %v381_v34  ;;  %v1036_v39 = vpack.c.bf16 %v400_v37, %v399_v36  ;;  %v384_v41 = vld [vmem:[%s1516_s1 + $0x68] sm:$0xff]  ;;  %v401_v42 = vld [vmem:[%s1516_s1 + $0xf0] sm:$0xff]  ;;  %v402_v43 = vld [vmem:[%s1516_s1 + $0xf8] sm:$0xff] }
  0x18   : > { %s945_s24 = sshll.u32 %s351_s16, 4  ;;  %v1038_v44 = vpack.c.bf16 %v384_v41, %v383_v40  ;;  %v1040_v45 = vpack.c.bf16 %v402_v43, %v401_v42  ;;  %v385_v46 = vld [vmem:[%s1516_s1 + $0x70] sm:$0xff]  ;;  %v386_v47 = vld [vmem:[%s1516_s1 + $0x78] sm:$0xff]  ;;  %v497_v52 = vld [vmem:[%s1518_s3] sm:$0xff] }
  0x19   : > { %s1341_s11 = scalar_lea.vmem %s1515_s0, %s945_s24  ;;  %v1042_v48 = vpack.c.bf16 %v386_v47, %v385_v46  ;;  %v498_v53 = vld [vmem:[%s1518_s3 + $0x8] sm:$0xff]  ;;  %v499_v55 = vld [vmem:[%s1518_s3 + $0x10] sm:$0xf]  ;;  %v915_v57 = vld [vmem:[%s1517_s2] ss:$0 sm:$0xff]  ;;  %v720_v47 = vlaneseq  ;;  %s832_s24 = ssub.s32 (%p1281_p5), 3, %s1301_s27 }
  0x1a   : > { %v368_v25 = vld [vmem:[%s1341_s11 + $0x8] sm:$0xff]  ;;  %1023 = vmatpush3.bf16.msra.mxu0 %v1022_v19  ;;  %v367_v49 = vld [vmem:[%s1341_s11] sm:$0xff]  ;;  %v370_v50 = vld [vmem:[%s1341_s11 + $0x18] sm:$0xff]  ;;  %v1044_v54 = vpack.c.bf16 %v498_v53, %v497_v52  ;;  %p833_p11 = scmp.lt.s32.totalorder (%p1281_p5), %s832_s24, 2 }
  0x1b   : > { %474 = vmatprep.mubr.f32.mxu0 %v368_v25  ;;  %1025 = vmatprep.subr.bf16.mxu0 %v1024_v20  ;;  %v369_v51 = vld [vmem:[%s1341_s11 + $0x10] sm:$0xff]  ;;  %v605_v9 = vld [vmem:[%s1520_s5] sm:$0xff]  ;;  %v606_v10 = vld [vmem:[%s1520_s5 + $0x8] sm:$0x3]  ;;  %s343_s11 = scalar_lea.vmem [#allocation2], %s911_s25 }
  0x1c   : > { %1045 = vmatprep.subr.bf16.mxu1 %v1044_v54  ;;  %v1048_v11 = vpack.c.bf16 %v606_v10, %v605_v9  ;;  %vm1049_vm4 = vmpackc.low %vm621_vm2, %vm1188_vm3  ;;  %v918_v12 = vld [vmem:[%s1519_s4] ss:$0 sm:$0xff]  ;;  %v713_v25 = vld [vmem:[%s1522_s7 + $0x8] sm:$0xff] }
  0x1d   : > { %1047 = vmatpush3.bf16.msra.mxu1 %v1044_v54  ;;  %v714_v29 = vld [vmem:[%s1522_s7 + $0x10] sm:$0xff]  ;;  %v924_v34 = vld [vmem:[%s1521_s6] ss:$0 sm:$0xff] }
  0x1e   : > { %1027 = vmatpush3.bf16.msra.mxu0 %v1026_v26  ;;  %1000 = vmatprep.subr.msk.mxu1 %vm514_vm0, %v499_v55  ;;  %v715_v26 = vld [vmem:[%s1522_s7 + $0x18] sm:$0xff] }
  0x1f   : > { %1029 = vmatprep.subr.bf16.mxu0 %v1028_v27  ;;  %v712_v27 = vld [vmem:[%s1522_s7] sm:$0xff]  ;;  %v1054_v28 = vpack.c.bf16 %v715_v26, %v713_v25 }
  0x20   : > { %v1056_v31 = vpack.c.bf16 %v714_v29, %v712_v27 }
  0x21   : > { %1001 = vmatpush3.msk.msra.mxu1 %vm514_vm0, %v499_v55 }
  0x22   : > { %1031 = vmatpush3.bf16.msra.mxu0 %v1030_v32  ;;  %1050 = vmatprep.subr.msk.bf16.mxu1 %vm1049_vm4, %v1048_v11  ;;  %v717_v32 = vld [vmem:[%s1522_s7 + $0x28] sm:$0xf] }
  0x23   : > { %1033 = vmatprep.subr.bf16.mxu0 %v1032_v33  ;;  %v716_v33 = vld [vmem:[%s1522_s7 + $0x20] sm:$0xf] }
  0x26   : > { %1035 = vmatpush3.bf16.msra.mxu0 %v1034_v38 }
  0x27   : > { %1037 = vmatprep.subr.bf16.mxu0 %v1036_v39 }
  0x2a   : > { %1039 = vmatpush3.bf16.msra.mxu0 %v1038_v44 }
  0x2b   : > { %1041 = vmatprep.subr.bf16.mxu0 %v1040_v45 }
  0x2e   : > { %1043 = vmatpush3.bf16.msra.mxu0 %v1042_v48  ;;  %v721_v48 = vshrl.u32 %v720_v47, 7 }
  0x31   : > { %475 = vmatmul.mubr.f32.vlgmr.msra.gmra.mrb[0].mxu0 %v367_v49  ;;  %v722_v49 = vsub.s32 0, %v721_v48 }
  0x32   : > { %479 = vmatprep.mubr.f32.mxu0 %v370_v50  ;;  %v718_v50 = vld [vmem:[%s1523_s8] sm:$0x3] }
  0x33   : > { %v723_v52 = vrot.slane %v718_v50, %v722_v49 }
  0x35   : > { %480 = vmatmul.mubr.f32.gmra.mrb[2].mxu0 %v369_v51  ;;  %v726_v51 = vsub.s32 1, %v721_v48 }
  0x37   : > { %v727_v53 = vrot.slane %v718_v50, %v726_v51 }
 0x104   : > { %v981_v56 = vpop.f32.mrb[0].mxu0 }
 0x105   : > { %v982_v58 = vpop.f32.mrb[1].mxu0 }
 0x106   : > { %v983_v59 = vadd.f32 %v982_v58, %v981_v56 }
 0x108   : > { %v477_v60 = vadd.f32 %v983_v59, %v915_v57  ;;  %v984_v61 = vpop.f32.mrb[2].mxu0 }
 0x109   : > { %v985_v62 = vpop.f32.mrb[3].mxu0 }
 0x10a   : > { %v916_v63 = vmul.f32 -1.442695, %v477_v60  ;;  %v986_v0 = vadd.f32 %v985_v62, %v984_v61 }
 0x10c   : > { %1100 = vpow2.f32 %v916_v63  ;;  %v482_v1 = vadd.f32 %v986_v0, %v915_v57 }
 0x10e   : > { %v917_v2 = vmul.f32 -1.442695, %v482_v1 }
 0x110   : > { %1102 = vpow2.f32 %v917_v2 }
 0x116   : > { %v1101_v3 = vpop.eup %1100 }
 0x117   : > { %v491_v4 = vadd.f32 1.0, %v1101_v3 }
 0x119   : > { %1104 = vrcp.f32 %v491_v4 }
 0x11a   : > { %v1103_v5 = vpop.eup %1102 }
 0x11b   : > { %v492_v6 = vadd.f32 1.0, %v1103_v5 }
 0x11d   : > { %1106 = vrcp.f32 %v492_v6 }
 0x123   : > { %v1105_v7 = vpop.eup %1104 }
 0x124   : > { %1002 = vmatprep.mubr.msk.f32.mxu1 %vm507_vm1, %v1105_v7 }
 0x127   : > { %v1107_v8 = vpop.eup %1106 }
 0x128   : > { %1003 = vmatmul.mubr.msk.f32.vlgmr.msra.gmra.mrb[0].mxu1 %vm507_vm1, %v1107_v8 }
 0x129   : > { %1053 = vmatpush3.bf16.msk.msra.mxu1 %vm1049_vm4, %v1048_v11 }
 0x12a   : > { %1055 = vmatprep.subr.bf16.mxu1 %v1054_v28 }
 0x1fb   : > { %v1004_v13 = vpop.f32.mrb[0].mxu1 }
 0x1fc   : > { %v590_v14 = vadd.f32 %v1004_v13, %v918_v12  ;;  %v584_v15 = vpop.f32.mrb[1].mxu1 }
 0x1fd   : > { %v585_v16 = vadd.f32 %v918_v12, %v584_v15 }
 0x1fe   : > { %v923_v17 = vmul.f32 -1.442695, %v590_v14 }
 0x1ff   : > { %v922_v18 = vmul.f32 -1.442695, %v585_v16 }
 0x200   : > { %1108 = vpow2.f32 %v923_v17 }
 0x201   : > { %1110 = vpow2.f32 %v922_v18 }
 0x20a   : > { %v1109_v19 = vpop.eup %1108 }
 0x20b   : > { %v1111_v20 = vpop.eup %1110  ;;  %v600_v21 = vadd.f32 1.0, %v1109_v19 }
 0x20c   : > { %v599_v22 = vadd.f32 1.0, %v1111_v20 }
 0x20e   : > { %1112 = vrcp.f32 %v599_v22 }
 0x20f   : > { %1114 = vrcp.f32 %v600_v21 }
 0x218   : > { %v1113_v23 = vpop.eup %1112 }
 0x219   : > { %v1115_v24 = vpop.eup %1114  ;;  %1009 = vmatprep.mubr.msk.f32.mxu1 %vm614_vm5, %v1113_v23 }
 0x21a   : > { %1010 = vmatmul.mubr.msk.f32.vlgmr.msra.gmra.mrb[2].mxu1 %vm614_vm5, %v1115_v24 }
 0x21b   : > { %806 = vmatprep.mubr.f32.mxu1 %v1189_v30  ;;  %1057 = vmatpush1.bf16.msra.mxu1 %v1056_v31 }
 0x21c   : > { %930 = vmatprep.subr.msk.mxu1 %vm514_vm0, %v717_v32 }
 0x21f   : > { %931 = vmatpush1.msk.msra.mxu1 %vm514_vm0, %v716_v33 }
 0x2ed   : > { %v1011_v35 = vpop.f32.mrb[2].mxu1 }
 0x2ee   : > { %v697_v36 = vadd.f32 %v1011_v35, %v924_v34  ;;  %v691_v37 = vpop.f32.mrb[3].mxu1 }
 0x2ef   : > { %v692_v38 = vadd.f32 %v924_v34, %v691_v37 }
 0x2f0   : > { %v929_v39 = vmul.f32 -1.442695, %v697_v36 }
 0x2f1   : > { %v928_v40 = vmul.f32 -1.442695, %v692_v38 }
 0x2f2   : > { %1116 = vpow2.f32 %v929_v39 }
 0x2f3   : > { %1118 = vpow2.f32 %v928_v40 }
 0x2fc   : > { %v1117_v41 = vpop.eup %1116 }
 0x2fd   : > { %v1119_v42 = vpop.eup %1118  ;;  %v707_v44 = vadd.f32 1.0, %v1117_v41 }
 0x2fe   : > { %v706_v43 = vadd.f32 1.0, %v1119_v42 }
 0x300   : > { %1120 = vrcp.f32 %v706_v43 }
 0x301   : > { %1122 = vrcp.f32 %v707_v44 }
 0x30a   : > { %v1121_v45 = vpop.eup %1120 }
 0x30b   : > { %932 = vmatmul.mubr.msk.f32.vlgmr.msra.gmra.mrb[4].mxu1 %vm507_vm1, %v1121_v45  ;;  %v1123_v46 = vpop.eup %1122 }
 0x30c   : > { %812 = vmatprep.mubr.f32.mxu1 %v1189_v30 }
 0x30f   : > { %933 = vmatmul.mubr.msk.f32.gmra.mrb[6].mxu1 %vm507_vm1, %v1123_v46 }
 0x3de   : > { %v808_v54 = vpop.f32.mrb[4].mxu1 }
 0x3df   : > { %v809_v55 = vadd.f32 %v808_v54, %v723_v52  ;;  %v810_v56 = vpop.f32.mrb[5].mxu1 }
 0x3e0   : > { %v811_v57 = vadd.f32 %v810_v56, %v727_v53  ;;  %830 = sbr.rel (!%p1281_p5) target bundleno = 1027 (0x403), region = 60 }
 0x3e1   : > { %819 = vst [vmem:[%s343_s11] sm:$0xff] %v809_v55 }
 0x3e2   : > { %820 = vst [vmem:[%s343_s11 + $0x8] sm:$0xff] %v811_v57  ;;  %v814_v58 = vpop.f32.mrb[6].mxu1 }
 0x3e3   : > { %v815_v59 = vadd.f32 %v814_v58, %v723_v52  ;;  %v816_v60 = vpop.f32.mrb[7].mxu1 }
 0x3e4   : > { %v817_v61 = vadd.f32 %v816_v60, %v727_v53 }
 0x3e5   : > { %821 = vst [vmem:[%s343_s11 + $0x10] sm:$0xff] %v815_v59 }
 0x3e6   : > { %822 = vst [vmem:[%s343_s11 + $0x18] sm:$0xff] %v817_v61 }
 0x3e7   : > { %s1536_s24 = smov (!%p833_p11, %s832_s24), 2 }
 0x3e8   : > { %s1460_s26 = sshll.u32 %s1536_s24, 8 }
 0x3e9   : > { %s838_s28 = ssub.s32 512, %s1460_s26 }
 0x3ea   : > { %839 = vsyncadd %s1455_s18, %s838_s28  ;;  %p938_p12 = scmp.ne.s32.totalorder %s1460_s26, 0  ;;  %s948_s29 = sshll.u32 %s1264_s13, 9 }
 0x3eb   : > { %s1469_s19 = scalar_lea.hbm %s1524_s9, %s948_s29  ;;  %s845_s16 = sshll.u32 %s343_s11, 4  ;;  %s1471_s16 = int_to_ptr.vmem [resolvable:$true] %s845_s16 }
 0x3ec   : > { %s1124_s27 = scalar_lea.vmem %s1471_s16, %s1460_s26  ;;  %s1190_s21 = smov [#allocation2]  }
 0x3ed   : > { %p1125_p13 = scmp.ne.s32.totalorder %s1471_s16, %s1124_s27  ;;  %s1128_s22 = sshll.u32 %s1190_s21, 4  ;;  %s1129_s22 = int_to_ptr.vmem [resolvable:$false] %s1128_s22 }
 0x3ee   : > { %s1130_s13 = scalar_lea.vmem %s1129_s22, 1024  ;;  %p1131_p2 = scmp.lt.s32.totalorder %s1471_s16, %s1129_s22 }
 0x3ef   : > { %p1126_p0 = pnand %p1125_p13, %p938_p12  ;;  %p1132_p3 = scmp.lt.s32.totalorder %s1130_s13, %s1124_s27 }
 0x3f1   : > { %p1127_p1 = pneg %p1126_p0  ;;  %p1133_p4 = por %p1132_p3, %p1131_p2 }
 0x3f3   : > { %p1134_p5 = pnand %p1133_p4, %p1127_p1 }
 0x3f5   : > { %1137 = shalt.err (!%p1134_p5)
}
 0x3f6   : > { %s1138_s23 = scalar_lea.hbm %s1469_s19, %s1460_s26  ;;  %s1142_s24 = scalar_lea.hbm %s1524_s9, 768 }
 0x3f7   : > { %p1139_p7 = scmp.ne.s32.totalorder %s1469_s19, %s1138_s23  ;;  %p1143_p10 = scmp.lt.u32.totalorder %s1469_s19, %s1524_s9 }
 0x3f8   : > { %p1144_p11 = scmp.lt.u32.totalorder %s1142_s24, %s1138_s23  ;;  %p1146_p0 = scmp.lt.u32.totalorder %s1138_s23, %s1469_s19 }
 0x3f9   : > { %p1140_p8 = pnand %p1139_p7, %p938_p12 }
 0x3fa   : > { %p1145_p13 = por %p1144_p11, %p1143_p10 }
 0x3fb   : > { %p1141_p9 = pneg %p1140_p8 }
 0x3fc   : > { %p1147_p1 = por %p1146_p0, %p1145_p13 }
 0x3fe   : > { %p1148_p2 = pnand %p1147_p1, %p1141_p9 }
 0x400   : > { %1151 = shalt.err (!%p1148_p2)
}
 0x401   : > { %s1191_s14 = smov 256   ;;  %s1192_s17 = smov 16  }
 0x402   : > { %851 = dma.vmem_to_hbm [thread:$0]  (%p938_p12), %s1471_s16, %s1460_s26, %s1469_s19, %s1455_s18, %s1191_s14, %s1191_s14, %s1192_s17  }
 0x403 PF: > { %p1063_p3 = scmp.ge.s32.totalorder %s1186_s12, 2  ;;  %s860_s27 = sand.u32 1, %s1174_s30  }
 0x404   : > { %s861_s21 = scalar_lea.sflag [#allocation3], %s860_s27 }
 0x405   : > { %p1060_p4 = pnand %p1063_p3, %p1285_p6 }
 0x407   : > { %1169 = dma.done.wait (!%p1060_p4), %s861_s21, 512  }
 0x408   : > { %1171 = vsyncadd (!%p1060_p4), %s861_s21, 4294966784  ;;  %s1530_s22 = sld [smem:[#allocation5_spill]]  ;;  %s1531_s11 = sld [smem:[#allocation6_spill]] }
 0x409   : > { %p19_p5 = scmp.ge.s32.totalorder %s1268_s15, 4   ;;  %s1532_s30 = smov %s1178_s10 }
 0x40a   : > { %s1534_s12 = smov %s1268_s15 }
 0x40b   :  { %21 = sbr.rel (!%p19_p5) target bundleno = 3 (0x3), region = 91 }
 0x40e   : > { %s1533_s10 = smov %s1530_s22 }
 0x412   :  { %866 = vsyncpa [#allocation3], 1 }
 0x413   :  { %868 = vsyncpa [#allocation3 + $0x1], 1 }

</bundles_post_ra>
